<compile_context>
chip_gen: v7x
topology: tpu7x:2x2x1
jax: 0.10.0
libtpu: 0.0.40
codegen_flags: <defaults>
</compile_context>

<pallas_src>
import jax
import jax.numpy as jnp
from jax.experimental import pallas as pl
from jax.experimental.pallas import tpu as pltpu


def _round_up(n: int, m: int) -> int:
    return ((n + m - 1) // m) * m


# --------------------------------------------------------------------------------------
# Kernel
# --------------------------------------------------------------------------------------
def _make_mlp_kernel(num_hidden_layers: int, batch: int, batch_pad: int, eps: float):
    """Fused MLP kernel.

    Ref order:
      x        (B_pad, D0_pad)        bf16  (padded rows/cols are zero)
      [W_i (Din_pad, Dout_pad) bf16, gamma_i (1, Dout_pad) f32, beta_i (1, Dout_pad) f32] * L
      W_out    (H_pad, 128)           bf16
      b_out    (1, 128)               f32
      out      (B_pad, 128)           f32

    Contract: padded columns of gamma_i / beta_i / W_i and padded rows of x must be
    exactly zero so padded feature columns / batch rows stay zero through every layer
    (prepare_mlp_params() guarantees this).
    """
    inv_b = 1.0 / float(batch)

    def kernel(*refs):
        x_ref = refs[0]
        out_ref = refs[-1]
        prefs = refs[1:-1]

        # Row mask built in-kernel (no extra input DMA): 1.0 on real rows, 0.0 on pad.
        row_ids = jax.lax.broadcasted_iota(jnp.int32, (batch_pad, 1), 0)
        mask = (row_ids < batch).astype(jnp.float32)

        h = x_ref[...]  # bf16

        idx = 0
        for _ in range(num_hidden_layers):
            w_ref, g_ref, be_ref = prefs[idx:idx + 3]
            idx += 3

            # Linear (hidden bias dropped: exactly cancelled by BN mean subtraction).
            z = jnp.dot(h, w_ref[...], preferred_element_type=jnp.float32)

            # BatchNorm1d, training mode, two-pass batch statistics.
            # Padded rows of z are exactly zero, so the sum over all rows divided by
            # the true batch size is the exact mean over real rows.
            mean = jnp.sum(z, axis=0, keepdims=True) * inv_b
            centered = (z - mean) * mask                       # re-zero padded rows
            var = jnp.sum(centered * centered, axis=0, keepdims=True) * inv_b
            scale = g_ref[...] * jax.lax.rsqrt(var + eps)      # folded gamma * rsqrt

            # scale + beta + ReLU; re-zero padded rows so next layer's stats stay exact.
            a = jnp.maximum(centered * scale + be_ref[...], 0.0) * mask
            h = a.astype(jnp.bfloat16)

        # Output layer: Linear(last_hidden -> 1), written into a lane-dense 128-wide
        # block (only column 0 is real; sliced in the wrapper).
        w_out_ref, b_out_ref = prefs[idx], prefs[idx + 1]
        y = jnp.dot(h, w_out_ref[...], preferred_element_type=jnp.float32) + b_out_ref[...]
        out_ref[...] = y

    return kernel


# --------------------------------------------------------------------------------------
# One-time parameter preparation (hoisted out of the per-call path)
# --------------------------------------------------------------------------------------
def prepare_mlp_params(params, num_hidden_layers, *, lane_multiple=128):
    """Pad weights to lane multiples, cast matmul operands to bf16, drop hidden biases.

    params: flat list [W_i, b_i, gamma_i, beta_i]*L + [W_out, b_out], W stored
    (in_features, out_features).  Keep lane_multiple=128; padding narrow layers to 256
    only adds zero-FLOPs, it does not fill the MXU.
    """
    dims = []
    hidden = []
    idx = 0
    in_dim = params[0].shape[0]
    dims.append(in_dim)
    for _ in range(num_hidden_layers):
        w, _b, g, be = params[idx:idx + 4]
        idx += 4
        hidden.append((w, g, be))
        dims.append(w.shape[1])
    w_out, b_out = params[idx], params[idx + 1]

    pdims = [_round_up(d, lane_multiple) for d in dims]
    out_pad = lane_multiple  # true output width is 1

    layers = []
    for li, (w, g, be) in enumerate(hidden):
        din, dout = w.shape
        wp = jnp.zeros((pdims[li], pdims[li + 1]), jnp.bfloat16)
        wp = wp.at[:din, :dout].set(w.astype(jnp.bfloat16))
        gp = jnp.zeros((1, pdims[li + 1]), jnp.float32).at[:, :dout].set(
            jnp.asarray(g, jnp.float32).reshape(1, -1))
        bep = jnp.zeros((1, pdims[li + 1]), jnp.float32).at[:, :dout].set(
            jnp.asarray(be, jnp.float32).reshape(1, -1))
        layers.append((wp, gp, bep))

    wop = jnp.zeros((pdims[-1], out_pad), jnp.bfloat16)
    wop = wop.at[:dims[-1], :1].set(w_out.astype(jnp.bfloat16))
    bop = jnp.zeros((1, out_pad), jnp.float32).at[:, :1].set(
        jnp.asarray(b_out, jnp.float32).reshape(1, 1))

    return {
        "layers": layers,
        "w_out": wop,
        "b_out": bop,
        "in_dim": in_dim,
        "dims": dims,
        "pdims": pdims,
        "out_pad": out_pad,
    }


def _vmem_budget_bytes():
    """Per-TensorCore VMEM capacity minus headroom for compiler scratch / DMA descriptors."""
    try:
        cap = int(pltpu.get_tpu_info().vmem_capacity_bytes)
    except Exception:
        cap = 64 << 20  # conservative: v7x per-TC size
    return cap - (8 << 20)


# --------------------------------------------------------------------------------------
# Per-call wrapper: pads x only, then calls the fused kernel.
# --------------------------------------------------------------------------------------
def mlp_forward(x, prepared, num_hidden_layers, *, eps=1e-5):
    batch, in_dim = x.shape
    assert in_dim == prepared["in_dim"], (in_dim, prepared["in_dim"])

    pdims = prepared["pdims"]
    out_pad = prepared["out_pad"]
    # bf16 packs two sublane rows per vreg row -> pad batch to a multiple of 16.
    batch_pad = _round_up(max(batch, 1), 16)

    xp = jnp.zeros((batch_pad, pdims[0]), jnp.bfloat16)
    xp = xp.at[:batch, :in_dim].set(x.astype(jnp.bfloat16))

    kernel_inputs = [xp]
    for wp, gp, bep in prepared["layers"]:
        kernel_inputs += [wp, gp, bep]
    kernel_inputs += [prepared["w_out"], prepared["b_out"]]

    # --- VMEM accounting (all static Python ints) ---------------------------------
    in_bytes = sum(int(a.size) * a.dtype.itemsize for a in kernel_inputs)
    out_bytes = batch_pad * out_pad * 4
    max_pd = max(pdims + [out_pad])
    act_bytes = 4 * batch_pad * max_pd * 4          # ~4 live f32 activation slabs
    needed = in_bytes + out_bytes + act_bytes + (4 << 20)

    budget = _vmem_budget_bytes()
    if needed > budget:
        # TODO(synk): fall back to the batch-tiled two-pass-BN grid here.
        raise ValueError(
            f"MLP working set ({needed>>20} MiB) exceeds VMEM budget ({budget>>20} MiB); "
            "batch-tiled path not implemented yet.")
    vmem_limit = int(min(max(needed, 16 << 20), budget))

    # Advisory cost estimate.
    flops = 0
    for li in range(num_hidden_layers):
        flops += 2 * batch_pad * pdims[li] * pdims[li + 1]
    flops += 2 * batch_pad * pdims[-1] * out_pad
    transc = sum(pdims[1:1 + num_hidden_layers])    # one rsqrt row per hidden layer

    kernel = _make_mlp_kernel(num_hidden_layers, batch, batch_pad, eps)
    vmem_spec = pl.BlockSpec(memory_space=pltpu.MemorySpace.VMEM)

    yp = pl.pallas_call(
        kernel,
        out_shape=jax.ShapeDtypeStruct((batch_pad, out_pad), jnp.float32),
        in_specs=[vmem_spec] * len(kernel_inputs),
        out_specs=vmem_spec,
        compiler_params=pltpu.CompilerParams(vmem_limit_bytes=vmem_limit),
        cost_estimate=pl.CostEstimate(flops=flops, transcendentals=transc,
                                      bytes_accessed=in_bytes + out_bytes),
    )(*kernel_inputs)

    # Lane-dense (B_pad, 128) kernel output; slice to the true (batch, 1) result.
    return yp[:batch, :1]


# --------------------------------------------------------------------------------------
# Init + pure-JAX reference
# --------------------------------------------------------------------------------------
def init_mlp_params(key, input_dim, embed_dims):
    """Mimics nn.Linear default init (uniform +/- 1/sqrt(fan_in)); BN gamma=1, beta=0.
    Returns flat list [W_i, b_i, gamma_i, beta_i]*L + [W_out, b_out]."""
    params = []
    in_dim = input_dim
    for embed_dim in embed_dims:
        key, kw, kb = jax.random.split(key, 3)
        bound = 1.0 / jnp.sqrt(in_dim)
        w = jax.random.uniform(kw, (in_dim, embed_dim), jnp.float32, -bound, bound)
        b = jax.random.uniform(kb, (1, embed_dim), jnp.float32, -bound, bound)
        gamma = jnp.ones((1, embed_dim), jnp.float32)
        beta = jnp.zeros((1, embed_dim), jnp.float32)
        params += [w, b, gamma, beta]
        in_dim = embed_dim

    key, kw, kb = jax.random.split(key, 3)
    bound = 1.0 / jnp.sqrt(in_dim)
    w_out = jax.random.uniform(kw, (in_dim, 1), jnp.float32, -bound, bound)
    b_out = jax.random.uniform(kb, (1, 1), jnp.float32, -bound, bound)
    params += [w_out, b_out]
    return params


def mlp_reference(x, params, num_hidden_layers, eps=1e-5):
    """Pure-JAX f32 reference matching the PyTorch module (train-mode BN, with bias)."""
    h = x
    idx = 0
    for _ in range(num_hidden_layers):
        w, b, g, be = params[idx:idx + 4]
        idx += 4
        z = h @ w + b
        mean = jnp.mean(z, axis=0, keepdims=True)
        var = jnp.mean((z - mean) ** 2, axis=0, keepdims=True)
        z = (z - mean) * jax.lax.rsqrt(var + eps) * g + be
        h = jnp.maximum(z, 0.0)
    w_out, b_out = params[idx], params[idx + 1]
    return h @ w_out + b_out


if __name__ == "__main__":
    # Small shapes consistent with the module's (batch_size, input_dim) input.
    # batch is deliberately not a multiple of 16 to exercise the batch-pad/row-mask path.
    batch = 6
    input_dim = 32
    embed_dims = (32, 16)   # two hidden layers; dropout=0.0 default -> no dropout layer
    num_hidden = len(embed_dims)

    key = jax.random.PRNGKey(0)
    key, kx = jax.random.split(key)
    x = jax.random.normal(kx, (batch, input_dim), jnp.float32)

    params = init_mlp_params(key, input_dim, embed_dims)

    # One-time parameter prep (padding / bf16 cast) — hoisted out of the hot path.
    prepared = prepare_mlp_params(params, num_hidden)

    fwd = jax.jit(lambda xx: mlp_forward(xx, prepared, num_hidden))
    y = jax.block_until_ready(fwd(x))

    y_ref = mlp_reference(x, params, num_hidden)
    assert y.shape == (batch, 1), y.shape
    # bf16 matmul operands (f32 accumulation) -> loosened tolerance vs the f32 reference.
    assert jnp.allclose(y, y_ref, atol=5e-2, rtol=5e-2), (y, y_ref)

    print("KERNEL_OK")
</pallas_src>

<mosaic_0001>
module attributes {stable_mosaic.version = 11 : i64} {
  func.func @kernel(%arg0: memref<16x128xbf16, #tpu.memory_space<vmem>>, %arg1: memref<128x128xbf16, #tpu.memory_space<vmem>>, %arg2: memref<1x128xf32, #tpu.memory_space<vmem>>, %arg3: memref<1x128xf32, #tpu.memory_space<vmem>>, %arg4: memref<128x128xbf16, #tpu.memory_space<vmem>>, %arg5: memref<1x128xf32, #tpu.memory_space<vmem>>, %arg6: memref<1x128xf32, #tpu.memory_space<vmem>>, %arg7: memref<128x128xbf16, #tpu.memory_space<vmem>>, %arg8: memref<1x128xf32, #tpu.memory_space<vmem>>, %arg9: memref<16x128xf32, #tpu.memory_space<vmem>>) attributes {dimension_semantics = [], scalar_prefetch = 0 : i64, scratch_operands = 0 : i64, tpu.core_type = #tpu.core_type<tc>} {
    %0 = tpu.iota {dimensions = array<i32: 0>} : vector<16x1xi32>
    %c6_i32 = arith.constant 6 : i32
    %1 = vector.broadcast %c6_i32 : i32 to vector<16x1xi32>
    %2 = arith.cmpi slt, %0, %1 : vector<16x1xi32>
    %3 = arith.extui %2 : vector<16x1xi1> to vector<16x1xi32>
    %4 = arith.sitofp %3 : vector<16x1xi32> to vector<16x1xf32>
    %c0 = arith.constant 0 : index
    %c0_0 = arith.constant 0 : index
    %5 = vector.load %arg0[%c0, %c0_0] : memref<16x128xbf16, #tpu.memory_space<vmem>>, vector<16x128xbf16>
    %c0_1 = arith.constant 0 : index
    %c0_2 = arith.constant 0 : index
    %6 = vector.load %arg1[%c0_1, %c0_2] : memref<128x128xbf16, #tpu.memory_space<vmem>>, vector<128x128xbf16>
    %cst = arith.constant dense<0.000000e+00> : vector<16x128xf32>
    %7 = tpu.matmul %5, %6, %cst {dimension_numbers = #tpu.dot_dimension_numbers<[1], [0], [0], [1], [0, 0, 1, 1], [], []>} : vector<16x128xbf16>, vector<128x128xbf16>, vector<16x128xf32> -> vector<16x128xf32>
    %cst_3 = arith.constant dense<0.000000e+00> : vector<128xf32>
    %8 = vector.multi_reduction <add>, %7, %cst_3 [0] : vector<16x128xf32> to vector<128xf32>
    %9 = vector.shape_cast %8 : vector<128xf32> to vector<1x128xf32>
    %cst_4 = arith.constant 0.166666672 : f32
    %10 = vector.broadcast %cst_4 : f32 to vector<1x128xf32>
    %11 = arith.mulf %9, %10 : vector<1x128xf32>
    %12 = vector.broadcast %11 : vector<1x128xf32> to vector<16x128xf32>
    %13 = arith.subf %7, %12 : vector<16x128xf32>
    %14 = vector.broadcast %4 : vector<16x1xf32> to vector<16x128xf32>
    %15 = arith.mulf %13, %14 : vector<16x128xf32>
    %16 = arith.mulf %15, %15 : vector<16x128xf32>
    %cst_5 = arith.constant dense<0.000000e+00> : vector<128xf32>
    %17 = vector.multi_reduction <add>, %16, %cst_5 [0] : vector<16x128xf32> to vector<128xf32>
    %18 = vector.shape_cast %17 : vector<128xf32> to vector<1x128xf32>
    %cst_6 = arith.constant 0.166666672 : f32
    %19 = vector.broadcast %cst_6 : f32 to vector<1x128xf32>
    %20 = arith.mulf %18, %19 : vector<1x128xf32>
    %c0_7 = arith.constant 0 : index
    %c0_8 = arith.constant 0 : index
    %21 = vector.load %arg2[%c0_7, %c0_8] : memref<1x128xf32, #tpu.memory_space<vmem>>, vector<1x128xf32>
    %cst_9 = arith.constant 9.99999974E-6 : f32
    %22 = vector.broadcast %cst_9 : f32 to vector<1x128xf32>
    %23 = arith.addf %20, %22 : vector<1x128xf32>
    %24 = math.rsqrt %23 : vector<1x128xf32>
    %25 = arith.mulf %21, %24 : vector<1x128xf32>
    %26 = vector.broadcast %25 : vector<1x128xf32> to vector<16x128xf32>
    %27 = arith.mulf %15, %26 : vector<16x128xf32>
    %c0_10 = arith.constant 0 : index
    %c0_11 = arith.constant 0 : index
    %28 = vector.load %arg3[%c0_10, %c0_11] : memref<1x128xf32, #tpu.memory_space<vmem>>, vector<1x128xf32>
    %29 = vector.broadcast %28 : vector<1x128xf32> to vector<16x128xf32>
    %30 = arith.addf %27, %29 : vector<16x128xf32>
    %cst_12 = arith.constant 0.000000e+00 : f32
    %31 = vector.broadcast %cst_12 : f32 to vector<16x128xf32>
    %32 = arith.maximumf %30, %31 : vector<16x128xf32>
    %33 = vector.broadcast %4 : vector<16x1xf32> to vector<16x128xf32>
    %34 = arith.mulf %32, %33 : vector<16x128xf32>
    %35 = arith.truncf %34 : vector<16x128xf32> to vector<16x128xbf16>
    %c0_13 = arith.constant 0 : index
    %c0_14 = arith.constant 0 : index
    %36 = vector.load %arg4[%c0_13, %c0_14] : memref<128x128xbf16, #tpu.memory_space<vmem>>, vector<128x128xbf16>
    %cst_15 = arith.constant dense<0.000000e+00> : vector<16x128xf32>
    %37 = tpu.matmul %35, %36, %cst_15 {dimension_numbers = #tpu.dot_dimension_numbers<[1], [0], [0], [1], [0, 0, 1, 1], [], []>} : vector<16x128xbf16>, vector<128x128xbf16>, vector<16x128xf32> -> vector<16x128xf32>
    %cst_16 = arith.constant dense<0.000000e+00> : vector<128xf32>
    %38 = vector.multi_reduction <add>, %37, %cst_16 [0] : vector<16x128xf32> to vector<128xf32>
    %39 = vector.shape_cast %38 : vector<128xf32> to vector<1x128xf32>
    %cst_17 = arith.constant 0.166666672 : f32
    %40 = vector.broadcast %cst_17 : f32 to vector<1x128xf32>
    %41 = arith.mulf %39, %40 : vector<1x128xf32>
    %42 = vector.broadcast %41 : vector<1x128xf32> to vector<16x128xf32>
    %43 = arith.subf %37, %42 : vector<16x128xf32>
    %44 = vector.broadcast %4 : vector<16x1xf32> to vector<16x128xf32>
    %45 = arith.mulf %43, %44 : vector<16x128xf32>
    %46 = arith.mulf %45, %45 : vector<16x128xf32>
    %cst_18 = arith.constant dense<0.000000e+00> : vector<128xf32>
    %47 = vector.multi_reduction <add>, %46, %cst_18 [0] : vector<16x128xf32> to vector<128xf32>
    %48 = vector.shape_cast %47 : vector<128xf32> to vector<1x128xf32>
    %cst_19 = arith.constant 0.166666672 : f32
    %49 = vector.broadcast %cst_19 : f32 to vector<1x128xf32>
    %50 = arith.mulf %48, %49 : vector<1x128xf32>
    %c0_20 = arith.constant 0 : index
    %c0_21 = arith.constant 0 : index
    %51 = vector.load %arg5[%c0_20, %c0_21] : memref<1x128xf32, #tpu.memory_space<vmem>>, vector<1x128xf32>
    %cst_22 = arith.constant 9.99999974E-6 : f32
    %52 = vector.broadcast %cst_22 : f32 to vector<1x128xf32>
    %53 = arith.addf %50, %52 : vector<1x128xf32>
    %54 = math.rsqrt %53 : vector<1x128xf32>
    %55 = arith.mulf %51, %54 : vector<1x128xf32>
    %56 = vector.broadcast %55 : vector<1x128xf32> to vector<16x128xf32>
    %57 = arith.mulf %45, %56 : vector<16x128xf32>
    %c0_23 = arith.constant 0 : index
    %c0_24 = arith.constant 0 : index
    %58 = vector.load %arg6[%c0_23, %c0_24] : memref<1x128xf32, #tpu.memory_space<vmem>>, vector<1x128xf32>
    %59 = vector.broadcast %58 : vector<1x128xf32> to vector<16x128xf32>
    %60 = arith.addf %57, %59 : vector<16x128xf32>
    %cst_25 = arith.constant 0.000000e+00 : f32
    %61 = vector.broadcast %cst_25 : f32 to vector<16x128xf32>
    %62 = arith.maximumf %60, %61 : vector<16x128xf32>
    %63 = vector.broadcast %4 : vector<16x1xf32> to vector<16x128xf32>
    %64 = arith.mulf %62, %63 : vector<16x128xf32>
    %65 = arith.truncf %64 : vector<16x128xf32> to vector<16x128xbf16>
    %c0_26 = arith.constant 0 : index
    %c0_27 = arith.constant 0 : index
    %66 = vector.load %arg7[%c0_26, %c0_27] : memref<128x128xbf16, #tpu.memory_space<vmem>>, vector<128x128xbf16>
    %cst_28 = arith.constant dense<0.000000e+00> : vector<16x128xf32>
    %67 = tpu.matmul %65, %66, %cst_28 {dimension_numbers = #tpu.dot_dimension_numbers<[1], [0], [0], [1], [0, 0, 1, 1], [], []>} : vector<16x128xbf16>, vector<128x128xbf16>, vector<16x128xf32> -> vector<16x128xf32>
    %c0_29 = arith.constant 0 : index
    %c0_30 = arith.constant 0 : index
    %68 = vector.load %arg8[%c0_29, %c0_30] : memref<1x128xf32, #tpu.memory_space<vmem>>, vector<1x128xf32>
    %69 = vector.broadcast %68 : vector<1x128xf32> to vector<16x128xf32>
    %70 = arith.addf %67, %69 : vector<16x128xf32>
    %c0_31 = arith.constant 0 : index
    %c0_32 = arith.constant 0 : index
    %71 = vector.load %arg9[%c0_31, %c0_32] : memref<16x128xf32, #tpu.memory_space<vmem>>, vector<16x128xf32>
    tpu.vector_store %arg9[%c0_31, %c0_32], %70 {strides = array<i32>} : memref<16x128xf32, #tpu.memory_space<vmem>>, vector<16x128xf32>,
    return
  }
}

</mosaic_0001>

<bundles_post_ra>
// kernel: _lambda_.1
= control target key start
LH: loop header
LB: loop body
LE: loop exit
PB: predicated region body
PF: predicated region fallthrough
CT: control target
= control target key end

     0   :  { %14 = vsyncpa [#allocation3], 0  ;;  %s876_s0 = inlined_call_operand.vmem [shape: bf16[16,128], index: 0, kind: input, shape index: {}]   ;;  %s877_s1 = inlined_call_operand.hbm [shape: bf16[128,128], index: 1, kind: input, shape index: {}]   ;;  %s878_s2 = inlined_call_operand.vmem [shape: f32[1,128], index: 2, kind: input, shape index: {}]   ;;  %s879_s3 = inlined_call_operand.vmem [shape: f32[1,128], index: 3, kind: input, shape index: {}, may-alias: {3,6}]   ;;  %s880_s4 = inlined_call_operand.hbm [shape: bf16[128,128], index: 4, kind: input, shape index: {}]   ;;  %s881_s5 = inlined_call_operand.vmem [shape: f32[1,128], index: 5, kind: input, shape index: {}]   ;;  %s882_s6 = inlined_call_operand.vmem [shape: f32[1,128], index: 6, kind: input, shape index: {}, may-alias: {3,6}]   ;;  %s883_s7 = inlined_call_operand.vmem [shape: bf16[128,128], index: 7, kind: input, shape index: {}]   ;;  %s884_s8 = inlined_call_operand.vmem [shape: f32[1,128], index: 8, kind: input, shape index: {}]   ;;  %s885_s9 = inlined_call_operand.vmem [shape: f32[16,128], index: 9, kind: output, shape index: {}]  }
   0x1   :  { %15 = vsyncpa [#allocation5], 0  ;;  %s703_s30 = smov [#allocation2]   ;;  %s655_s13 = scalar_lea.hbm %s877_s1, 1024 }
   0x2   :  { %s23_s10 = sshll.u32 %s703_s30, 4  ;;  %p656_p0 = scmp.ne.s32.totalorder %s877_s1, %s655_s13  ;;  %s24_s10 = int_to_ptr.vmem [resolvable:$true] %s23_s10 }
   0x3   :  { %p659_p1 = scmp.lt.u32.totalorder %s655_s13, %s877_s1 }
   0x5   :  { %p661_p2 = pnand %p659_p1, %p656_p0 }
   0x7   :  { %664 = shalt.err (!%p661_p2)
}
   0x8   :  { %s665_s18 = scalar_lea.vmem %s24_s10, 1024  ;;  %p670_p4 = scmp.lt.s32.totalorder %s24_s10, %s24_s10 }
   0x9   :  { %p666_p3 = scmp.ne.s32.totalorder %s24_s10, %s665_s18  ;;  %p671_p5 = scmp.lt.s32.totalorder %s665_s18, %s665_s18 }
   0xb   :  { %p672_p6 = por %p671_p5, %p670_p4 }
   0xd   :  { %p673_p7 = pnand %p672_p6, %p666_p3 }
   0xf   :  { %676 = shalt.err (!%p673_p7)
}
  0x10   :  { %s704_s19 = smov 64   ;;  %s705_s20 = smov 4  }
  0x11   :  { %29 = dma.hbm_to_vmem [thread:$0]  %s877_s1, 1024, %s24_s10, [#allocation3], %s704_s19, %s704_s19, %s705_s20  }
  0x12   :  { %s706_s23 = smov [#allocation4]   ;;  %s677_s27 = scalar_lea.hbm %s880_s4, 1024 }
  0x13   :  { %s39_s24 = sshll.u32 %s706_s23, 4  ;;  %p678_p8 = scmp.ne.s32.totalorder %s880_s4, %s677_s27  ;;  %s40_s24 = int_to_ptr.vmem [resolvable:$true] %s39_s24 }
  0x14   :  { %p681_p9 = scmp.lt.u32.totalorder %s677_s27, %s880_s4 }
  0x16   :  { %p683_p10 = pnand %p681_p9, %p678_p8 }
  0x18   :  { %686 = shalt.err (!%p683_p10)
}
  0x19   :  { %s687_s12 = scalar_lea.vmem %s40_s24, 1024  ;;  %p692_p12 = scmp.lt.s32.totalorder %s40_s24, %s40_s24 }
  0x1a   :  { %p688_p11 = scmp.ne.s32.totalorder %s40_s24, %s687_s12  ;;  %p693_p13 = scmp.lt.s32.totalorder %s687_s12, %s687_s12 }
  0x1c   :  { %p694_p0 = por %p693_p13, %p692_p12 }
  0x1e   :  { %p695_p1 = pnand %p694_p0, %p688_p11 }
  0x20   :  { %698 = shalt.err (!%p695_p1)
}
  0x21   :  { %45 = dma.hbm_to_vmem [thread:$0]  %s880_s4, 1024, %s40_s24, [#allocation5], %s704_s19, %s704_s19, %s705_s20  }
  0x22   :  { %699 = dma.done.wait [#allocation3], 1024  }
  0x23   :  { %700 = vsyncadd [#allocation3], 4294966272 }
  0x24   :  { %701 = dma.done.wait [#allocation5], 1024  }
  0x25   :  { %702 = vsyncadd [#allocation5], 4294966272  ;;  %v707_v0 = vmov 0.0   ;;  %vm708_vm0 = vmmov 0   ;;  %v626_v1 = vld [vmem:[#allocation2] sm:$0xff]   ;;  %v627_v2 = vld [vmem:[#allocation2 + $0x8] sm:$0xff]   ;;  %v61_v24 = vlaneseq }
  0x26   :  { %560 = vmatprep.subr.bf16.mxu0 %v707_v0  ;;  %576 = vmatprep.mubr.msk.bf16.mxu0 %vm708_vm0, %v707_v0  ;;  %v628_v3 = vld [vmem:[#allocation2 + $0x10] sm:$0xff]   ;;  %v629_v4 = vld [vmem:[#allocation2 + $0x18] sm:$0xff]   ;;  %v630_v5 = vld [vmem:[#allocation2 + $0x20] sm:$0xff]  }
  0x27   :  { %580 = vmatprep.subr.bf16.mxu1 %v707_v0  ;;  %596 = vmatprep.mubr.msk.bf16.mxu1 %vm708_vm0, %v707_v0  ;;  %v631_v6 = vld [vmem:[#allocation2 + $0x28] sm:$0xff]   ;;  %v632_v7 = vld [vmem:[#allocation2 + $0x30] sm:$0xff]   ;;  %v633_v8 = vld [vmem:[#allocation2 + $0x38] sm:$0xff]   ;;  %v809_v27 = vshrl.u32 %v61_v24, 7 }
  0x28   :  { %561 = vmatpush3.bf16.msra.mxu0 %v626_v1  ;;  %v634_v9 = vld [vmem:[%s876_s0] sm:$0xff]   ;;  %v636_v11 = vld [vmem:[#allocation4 + $0x8] sm:$0xff]   ;;  %v637_v12 = vld [vmem:[#allocation4 + $0x10] sm:$0xff]  }
  0x29   :  { %562 = vmatprep.subr.bf16.mxu0 %v707_v0  ;;  %v635_v10 = vld [vmem:[#allocation4] sm:$0xff]   ;;  %v638_v13 = vld [vmem:[#allocation4 + $0x18] sm:$0xff]   ;;  %v640_v15 = vld [vmem:[#allocation4 + $0x28] sm:$0xff]   ;;  %vm64_vm1 = vcmp.lt.s32.totalorder %v809_v27, 6  ;;  %v212_v49 = vsub.s32 0, %v809_v27 }
  0x2a   :  { %581 = vmatpush3.bf16.msra.mxu1 %v635_v10  ;;  %v639_v14 = vld [vmem:[#allocation4 + $0x20] sm:$0xff]   ;;  %v641_v16 = vld [vmem:[#allocation4 + $0x30] sm:$0xff]   ;;  %v642_v17 = vld [vmem:[#allocation4 + $0x38] sm:$0xff]   ;;  %v813_v32 = vsel %vm64_vm1, 1.0, %v707_v0 }
  0x2b   :  { %582 = vmatprep.subr.bf16.mxu1 %v707_v0  ;;  %v205_v48 = vld [vmem:[%s878_s2] sm:$0x1]  ;;  %v644_v1 = vld [vmem:[%s883_s7 + $0x8] sm:$0xff]  }
  0x2c   :  { %563 = vmatpush3.bf16.msra.mxu0 %v627_v2  ;;  %v514_v53 = vld [vmem:[%s879_s3] ss:$0 sm:$0xff]  ;;  %v645_v2 = vld [vmem:[%s883_s7 + $0x10] sm:$0xff]  }
  0x2d   :  { %564 = vmatprep.subr.bf16.mxu0 %v707_v0  ;;  %v643_v63 = vld [vmem:[%s883_s7] sm:$0xff]  }
  0x2e   :  { %583 = vmatpush3.bf16.msra.mxu1 %v636_v11  ;;  %v524_v27 = vld [vmem:[%s884_s8] ss:$0 sm:$0xff] }
  0x2f   :  { %584 = vmatprep.subr.bf16.mxu1 %v707_v0 }
  0x30   :  { %565 = vmatpush3.bf16.msra.mxu0 %v628_v3  ;;  %v646_v3 = vld [vmem:[%s883_s7 + $0x18] sm:$0xff]  }
  0x31   :  { %566 = vmatprep.subr.bf16.mxu0 %v707_v0 }
  0x32   :  { %585 = vmatpush3.bf16.msra.mxu1 %v637_v12 }
  0x33   :  { %586 = vmatprep.subr.bf16.mxu1 %v707_v0 }
  0x34   :  { %567 = vmatpush3.bf16.msra.mxu0 %v629_v4  ;;  %v647_v4 = vld [vmem:[%s883_s7 + $0x20] sm:$0xff]  }
  0x35   :  { %568 = vmatprep.subr.bf16.mxu0 %v707_v0 }
  0x36   :  { %587 = vmatpush3.bf16.msra.mxu1 %v638_v13 }
  0x37   :  { %588 = vmatprep.subr.bf16.mxu1 %v707_v0 }
  0x38   :  { %569 = vmatpush3.bf16.msra.mxu0 %v630_v5  ;;  %v648_v5 = vld [vmem:[%s883_s7 + $0x28] sm:$0xff]  }
  0x39   :  { %570 = vmatprep.subr.bf16.mxu0 %v707_v0 }
  0x3a   :  { %589 = vmatpush3.bf16.msra.mxu1 %v639_v14 }
  0x3b   :  { %590 = vmatprep.subr.bf16.mxu1 %v707_v0 }
  0x3c   :  { %571 = vmatpush3.bf16.msra.mxu0 %v631_v6  ;;  %v649_v6 = vld [vmem:[%s883_s7 + $0x30] sm:$0xff]  }
  0x3d   :  { %572 = vmatprep.subr.bf16.mxu0 %v707_v0 }
  0x3e   :  { %591 = vmatpush3.bf16.msra.mxu1 %v640_v15 }
  0x3f   :  { %592 = vmatprep.subr.bf16.mxu1 %v707_v0 }
  0x40   :  { %573 = vmatpush3.bf16.msra.mxu0 %v632_v7  ;;  %v650_v7 = vld [vmem:[%s883_s7 + $0x38] sm:$0xff]  }
  0x41   :  { %574 = vmatprep.subr.bf16.mxu0 %v707_v0 }
  0x42   :  { %593 = vmatpush3.bf16.msra.mxu1 %v641_v16 }
  0x43   :  { %594 = vmatprep.subr.bf16.mxu1 %v707_v0 }
  0x44   :  { %575 = vmatpush3.bf16.msra.mxu0 %v633_v8 }
  0x45   :  { %600 = vmatprep.subr.bf16.mxu0 %v707_v0 }
  0x46   :  { %595 = vmatpush3.bf16.msra.mxu1 %v642_v17 }
  0x47   :  { %577 = vmatmul.mubr.bf16.vlgmr.msra.gmra.mrb[0].mxu0 %v634_v9 }
  0x48   :  { %616 = vmatprep.mubr.msk.bf16.mxu0 %vm708_vm0, %v707_v0  ;;  %601 = vmatpush3.bf16.msra.mxu0 %v643_v63 }
  0x49   :  { %602 = vmatprep.subr.bf16.mxu0 %v707_v0 }
  0x4c   :  { %603 = vmatpush3.bf16.msra.mxu0 %v644_v1 }
  0x4d   :  { %604 = vmatprep.subr.bf16.mxu0 %v707_v0 }
  0x50   :  { %605 = vmatpush3.bf16.msra.mxu0 %v645_v2 }
  0x51   :  { %606 = vmatprep.subr.bf16.mxu0 %v707_v0 }
  0x54   :  { %607 = vmatpush3.bf16.msra.mxu0 %v646_v3 }
  0x55   :  { %608 = vmatprep.subr.bf16.mxu0 %v707_v0 }
  0x58   :  { %609 = vmatpush3.bf16.msra.mxu0 %v647_v4 }
  0x59   :  { %610 = vmatprep.subr.bf16.mxu0 %v707_v0 }
  0x5c   :  { %611 = vmatpush3.bf16.msra.mxu0 %v648_v5 }
  0x5d   :  { %612 = vmatprep.subr.bf16.mxu0 %v707_v0 }
  0x60   :  { %613 = vmatpush3.bf16.msra.mxu0 %v649_v6 }
  0x61   :  { %614 = vmatprep.subr.bf16.mxu0 %v707_v0 }
  0x64   :  { %615 = vmatpush3.bf16.msra.mxu0 %v650_v7 }
 0x11a   :  { %v176_v18 = vpop.f32.mrb[0].mxu0 }
 0x11b   :  { %v578_v19 = vpop.f32.mrb[1].mxu0 }
 0x11c   :  { %v179_v20 = vpop.f32.mrb[2].mxu0 }
 0x11d   :  { %v183_v21 = vadd.f32 %v179_v20, %v176_v18  ;;  %v579_v22 = vpop.f32.mrb[3].mxu0 }
 0x11f   :  { %v184_v23 = vrot.slane %v183_v21, 4 }
 0x121   :  { %v185_v25 = vadd.f32 %v184_v23, %v183_v21 }
 0x123   :  { %v186_v26 = vrot.slane %v185_v25, 2 }
 0x125   :  { %v187_v28 = vadd.f32 %v186_v26, %v185_v25 }
 0x127   :  { %v188_v29 = vrot.slane %v187_v28, 1 }
 0x129   :  { %v189_v30 = vadd.f32 %v188_v29, %v187_v28 }
 0x12b   :  { %v190_v31 = vmul.f32 0.16666667, %v189_v30 }
 0x12d   :  { %v191_v33 = vsub.f32 %v176_v18, %v190_v31  ;;  %v192_v34 = vsub.f32 %v179_v20, %v190_v31 }
 0x12f   :  { %v193_v35 = vmul.f32 %v813_v32, %v191_v33  ;;  %v194_v36 = vmul.f32 0.0, %v192_v34 }
 0x131   :  { %v195_v37 = vmul.f32 %v193_v35, %v193_v35  ;;  %v196_v38 = vmul.f32 %v194_v36, %v194_v36 }
 0x133   :  { %v197_v39 = vadd.f32 %v196_v38, %v195_v37 }
 0x135   :  { %v198_v40 = vrot.slane %v197_v39, 4 }
 0x137   :  { %v199_v41 = vadd.f32 %v198_v40, %v197_v39  ;;  %v523_v40 = vld [vmem:[%s882_s6] ss:$0 sm:$0xff] }
 0x139   :  { %v200_v42 = vrot.slane %v199_v41, 2 }
 0x13b   :  { %v201_v43 = vadd.f32 %v200_v42, %v199_v41 }
 0x13d   :  { %v202_v44 = vrot.slane %v201_v43, 1 }
 0x13f   :  { %v203_v45 = vadd.f32 %v202_v44, %v201_v43 }
 0x141   :  { %v204_v46 = vmul.f32 0.16666667, %v203_v45 }
 0x143   :  { %v206_v47 = vadd.f32 1e-05, %v204_v46 }
 0x145   :  { %651 = vrsqrt.f32 %v206_v47 }
 0x14f   :  { %v652_v50 = vpop.eup %651 }
 0x150   :  { %v208_v51 = vmul.f32 %v652_v50, %v205_v48 }
 0x152   :  { %v213_v52 = vrot.slane %v208_v51, %v212_v49 }
 0x154   :  { %v215_v54 = vmul.f32 %v213_v52, %v193_v35  ;;  %v216_v55 = vmul.f32 %v213_v52, %v194_v36  ;;  %v358_v36 = vld [vmem:[%s881_s5] sm:$0x1] }
 0x156   :  { %v224_v56 = vadd.f32 %v514_v53, %v215_v54  ;;  %v225_v57 = vadd.f32 %v514_v53, %v216_v55 }
 0x158   :  { %v226_v58 = vmax.f32 %v224_v56, 0.0  ;;  %v227_v59 = vmax.f32 %v225_v57, 0.0 }
 0x15a   :  { %v228_v60 = vmul.f32 %v813_v32, %v226_v58  ;;  %v229_v61 = vmul.f32 0.0, %v227_v59 }
 0x15c   :  { %v230_v62 = vpack.c.bf16 %v229_v61, %v228_v60 }
 0x15e   :  { %597 = vmatmul.mubr.bf16.vlgmr.msra.gmra.mrb[0].mxu1 %v230_v62 }
 0x231   :  { %v329_v8 = vpop.f32.mrb[0].mxu1 }
 0x232   :  { %v598_v9 = vpop.f32.mrb[1].mxu1 }
 0x233   :  { %v332_v10 = vpop.f32.mrb[2].mxu1 }
 0x234   :  { %v336_v11 = vadd.f32 %v332_v10, %v329_v8  ;;  %v599_v12 = vpop.f32.mrb[3].mxu1 }
 0x236   :  { %v337_v13 = vrot.slane %v336_v11, 4 }
 0x238   :  { %v338_v14 = vadd.f32 %v337_v13, %v336_v11 }
 0x23a   :  { %v339_v15 = vrot.slane %v338_v14, 2 }
 0x23c   :  { %v340_v16 = vadd.f32 %v339_v15, %v338_v14 }
 0x23e   :  { %v341_v17 = vrot.slane %v340_v16, 1 }
 0x240   :  { %v342_v18 = vadd.f32 %v341_v17, %v340_v16 }
 0x242   :  { %v343_v19 = vmul.f32 0.16666667, %v342_v18 }
 0x244   :  { %v344_v20 = vsub.f32 %v329_v8, %v343_v19  ;;  %v345_v21 = vsub.f32 %v332_v10, %v343_v19 }
 0x246   :  { %v346_v0 = vmul.f32 %v813_v32, %v344_v20  ;;  %v347_v22 = vmul.f32 0.0, %v345_v21 }
 0x248   :  { %v348_v23 = vmul.f32 %v346_v0, %v346_v0  ;;  %v349_v24 = vmul.f32 %v347_v22, %v347_v22 }
 0x24a   :  { %v350_v25 = vadd.f32 %v349_v24, %v348_v23 }
 0x24c   :  { %v351_v26 = vrot.slane %v350_v25, 4 }
 0x24e   :  { %v352_v28 = vadd.f32 %v351_v26, %v350_v25 }
 0x250   :  { %v353_v29 = vrot.slane %v352_v28, 2 }
 0x252   :  { %v354_v30 = vadd.f32 %v353_v29, %v352_v28 }
 0x254   :  { %v355_v31 = vrot.slane %v354_v30, 1 }
 0x256   :  { %v356_v33 = vadd.f32 %v355_v31, %v354_v30 }
 0x258   :  { %v357_v34 = vmul.f32 0.16666667, %v356_v33 }
 0x25a   :  { %v359_v35 = vadd.f32 1e-05, %v357_v34 }
 0x25c   :  { %653 = vrsqrt.f32 %v359_v35 }
 0x266   :  { %v654_v37 = vpop.eup %653 }
 0x267   :  { %v361_v38 = vmul.f32 %v654_v37, %v358_v36 }
 0x269   :  { %v366_v39 = vrot.slane %v361_v38, %v212_v49 }
 0x26b   :  { %v368_v41 = vmul.f32 %v366_v39, %v346_v0  ;;  %v369_v42 = vmul.f32 %v366_v39, %v347_v22 }
 0x26d   :  { %v377_v43 = vadd.f32 %v523_v40, %v368_v41  ;;  %v378_v44 = vadd.f32 %v523_v40, %v369_v42 }
 0x26f   :  { %v379_v45 = vmax.f32 %v377_v43, 0.0  ;;  %v380_v46 = vmax.f32 %v378_v44, 0.0 }
 0x271   :  { %v382_v47 = vmul.f32 0.0, %v380_v46  ;;  %v381_v48 = vmul.f32 %v813_v32, %v379_v45 }
 0x273   :  { %v383_v50 = vpack.c.bf16 %v382_v47, %v381_v48 }
 0x275   :  { %617 = vmatmul.mubr.bf16.vlgmr.msra.gmra.mrb[4].mxu0 %v383_v50 }
 0x348   :  { %v489_v49 = vpop.f32.mrb[4].mxu0 }
 0x349   :  { %v490_v51 = vadd.f32 %v524_v27, %v489_v49  ;;  %v618_v52 = vpop.f32.mrb[5].mxu0 }
 0x34a   :  { %v492_v53 = vpop.f32.mrb[6].mxu0 }
 0x34b   :  { %496 = vst [vmem:[%s885_s9] sm:$0xff] %v490_v51  ;;  %v493_v54 = vadd.f32 %v524_v27, %v492_v53  ;;  %v619_v55 = vpop.f32.mrb[7].mxu0 }
 0x34d   :  { %497 = vst [vmem:[%s885_s9 + $0x8] sm:$0xff] %v493_v54 }
 0x34e   :  { %502 = vsyncpa [#allocation3], 1 }
 0x34f   :  { %503 = vsyncpa [#allocation5], 1 }

</bundles_post_ra>
